<compile_context>
chip_gen: v5e
topology: v5e:2x2
jax: 0.10.0
libtpu: 0.0.40
codegen_flags: <defaults>
</compile_context>

<pallas_src>
import functools

import jax
import jax.numpy as jnp
from jax.experimental import pallas as pl
from jax.experimental.pallas import tpu as pltpu


def _shift_lanes(x, off):
    """out[..., i] = x[..., (i + off) % L]; wrapped lanes are masked out by the caller."""
    L = x.shape[-1]
    k = off % L
    if k == 0:
        return x
    # In-register lane rotation (jnp.roll(x, -off) semantics), static slices only.
    return jnp.concatenate([x[..., k:], x[..., :k]], axis=-1)


def spanconv_kernel(x_ref, w_ref, b_ref, pos_ref, o_ref, *, H, W, K):
    """One grid step = Bt images. Channels on sublanes, Bt*H*W flattened on lanes.

    x_ref:   (Cin,  L)        input block, L = Bt*H*W
    w_ref:   (K*K, Cout, Cin) folded per-tap weights
    b_ref:   (Cout, L)        folded bias map (tiled over the Bt images), f32
    pos_ref: (2,    L)        int32 row / col of every lane within its image
    o_ref:   (Cout, L)        output block
    """
    p = (K - 1) // 2
    x = x_ref[...]                       # (Cin, L)
    row = pos_ref[0:1, :]                # (1, L)
    col = pos_ref[1:2, :]                # (1, L)

    # Hoisted boundary masks: one per distinct row / col offset (None == all-true).
    row_ok = [None] * K
    col_ok = [None] * K
    for d in range(K):
        if d < p:
            row_ok[d] = row >= (p - d)
            col_ok[d] = col >= (p - d)
        elif d > p:
            row_ok[d] = row < (H - (d - p))
            col_ok[d] = col < (W - (d - p))

    # Accumulator starts from the folded bias map (f32); taps accumulate on top.
    acc = b_ref[...]
    for dy in range(K):
        for dx in range(K):
            off = (dy - p) * W + (dx - p)
            xs = _shift_lanes(x, off)
            # Zero out taps whose source pixel is outside the image ('same' zero padding).
            m = row_ok[dy]
            if col_ok[dx] is not None:
                m = col_ok[dx] if m is None else jnp.logical_and(m, col_ok[dx])
            if m is not None:
                xs = jnp.where(m, xs, jnp.zeros_like(xs))
            # (Cout, Cin) @ (Cin, L) on the MXU, f32 accumulation.
            acc = acc + jnp.dot(w_ref[dy * K + dx], xs,
                                preferred_element_type=jnp.float32)

    o_ref[...] = acc.astype(o_ref.dtype)


def _pick_batch_tile(N, HW, Cin, Cout):
    """Images per grid step: as many as fit a small VMEM budget, divisor of N,
    lane-aligned block width (or the whole batch)."""
    budget_lanes = max(HW, (4 * 1024 * 1024) // (4 * (Cin + Cout)))
    cap = max(1, budget_lanes // HW)
    for bt in range(min(N, cap), 0, -1):
        if N % bt:
            continue
        if bt == N or (bt * HW) % 128 == 0:
            return bt
    return N  # fallback: one grid step over the whole batch (always a legal block)


def spanconv(x_nchw, params, kernel_size):
    """SpanConv forward. x_nchw: (N, Cin, H, W) -> (N, Cout, H, W) (PyTorch layout)."""
    N, Cin, H, W = x_nchw.shape
    Cout = params["pw1_w"].shape[1]
    K = kernel_size
    # TODO(synk): even kernel_size (PyTorch output shrinks spatially) is not supported.
    assert K % 2 == 1, "odd kernel_size assumed (padding=(K-1)//2 preserves H, W)"
    p = (K - 1) // 2
    HW = H * W
    f32 = jnp.float32

    pw1_w, pw2_w = params["pw1_w"].astype(f32), params["pw2_w"].astype(f32)
    dw1_w, dw2_w = params["dw1_w"].astype(f32), params["dw2_w"].astype(f32)

    # --- fold the two (pointwise o depthwise) branches into one effective KxK conv ---
    # w_eff[t, co, ci] = pw1_w[ci, co]*dw1_w[t, co] + pw2_w[ci, co]*dw2_w[t, co]
    w_eff = (dw1_w[:, :, None] * jnp.transpose(pw1_w)[None, :, :]
             + dw2_w[:, :, None] * jnp.transpose(pw2_w)[None, :, :])   # (K*K, Cout, Cin)

    # Effective bias map (Cout, H*W): pointwise biases only propagate through in-bounds
    # depthwise taps (zero padding) -> spatially varying near the borders.
    kk = jnp.arange(K)[:, None]
    vy = (((jnp.arange(H)[None, :] + kk - p) >= 0)
          & ((jnp.arange(H)[None, :] + kk - p) < H)).astype(f32)       # (K, H)
    vx = (((jnp.arange(W)[None, :] + kk - p) >= 0)
          & ((jnp.arange(W)[None, :] + kk - p) < W)).astype(f32)       # (K, W)

    def tap_sum(dw_w):  # S[c, y, x] = sum over in-bounds taps of dw[dy, dx, c]
        return jnp.einsum("abc,ay,bx->cyx", dw_w.reshape(K, K, Cout), vy, vx)

    b_eff = (params["pw1_b"].astype(f32).reshape(Cout, 1, 1) * tap_sum(dw1_w)
             + params["pw2_b"].astype(f32).reshape(Cout, 1, 1) * tap_sum(dw2_w)
             + (params["dw1_b"] + params["dw2_b"]).astype(f32).reshape(Cout, 1, 1))
    b_eff = b_eff.reshape(Cout, HW)

    # --- lane-dense layout: channels on sublanes, flattened batch*spatial on lanes ---
    x_flat = jnp.transpose(x_nchw, (1, 0, 2, 3)).reshape(Cin, N * HW).astype(f32)

    Bt = _pick_batch_tile(N, HW, Cin, Cout)     # images per grid step
    L = Bt * HW
    b_tiled = jnp.tile(b_eff, (1, Bt))          # (Cout, L), identical for every step

    s = jnp.arange(L, dtype=jnp.int32)
    q = s % HW
    pos = jnp.stack([q // W, q % W]).astype(jnp.int32)   # (2, L): row, col within image

    kernel = functools.partial(spanconv_kernel, H=H, W=W, K=K)

    out_flat = pl.pallas_call(
        kernel,
        out_shape=jax.ShapeDtypeStruct((Cout, N * HW), jnp.float32),
        grid_spec=pltpu.PrefetchScalarGridSpec(
            num_scalar_prefetch=0,
            grid=(N // Bt,),
            in_specs=[
                pl.BlockSpec((Cin, L), lambda n: (0, n)),                 # x
                pl.BlockSpec((K * K, Cout, Cin), lambda n: (0, 0, 0)),    # folded weights
                pl.BlockSpec((Cout, L), lambda n: (0, 0)),                # folded bias map
                pl.BlockSpec((2, L), lambda n: (0, 0)),                   # row/col lane map
            ],
            out_specs=pl.BlockSpec((Cout, L), lambda n: (0, n)),
        ),
        compiler_params=pltpu.CompilerParams(
            dimension_semantics=("parallel",),        # batch axis: megacore-shardable
            vmem_limit_bytes=32 * 1024 * 1024,
        ),
    )(x_flat, w_eff, b_tiled, pos)

    # (Cout, N*H*W) -> NCHW (free wrapper reshape/transpose).
    return jnp.transpose(out_flat.reshape(Cout, N, H, W), (1, 0, 2, 3))


def reference_spanconv(x_nhwc, params, kernel_size):
    """Pure-JAX reference (matches PyTorch SpanConv semantics, NHWC layout)."""
    K = kernel_size
    Cout = params["pw1_w"].shape[1]
    dn = jax.lax.conv_dimension_numbers(x_nhwc.shape, (1, 1, 1, 1),
                                        ("NHWC", "HWIO", "NHWC"))

    def branch(pw_w, pw_b, dw_w, dw_b):
        t = jax.lax.conv_general_dilated(
            x_nhwc, pw_w.reshape(1, 1, *pw_w.shape), (1, 1), "VALID",
            dimension_numbers=dn)
        t = t + pw_b.reshape(1, 1, 1, -1)
        dw = dw_w.reshape(K, K, 1, Cout)
        t = jax.lax.conv_general_dilated(
            t, dw, (1, 1), "SAME", dimension_numbers=dn,
            feature_group_count=Cout)
        return t + dw_b.reshape(1, 1, 1, -1)

    return (branch(params["pw1_w"], params["pw1_b"], params["dw1_w"], params["dw1_b"])
            + branch(params["pw2_w"], params["pw2_b"], params["dw2_w"], params["dw2_b"]))


def init_params(key, in_channels, out_channels, kernel_size):
    K = kernel_size
    ks = jax.random.split(key, 8)
    scale = 0.1
    return {
        "pw1_w": scale * jax.random.normal(ks[0], (in_channels, out_channels), jnp.float32),
        "pw1_b": scale * jax.random.normal(ks[1], (1, out_channels), jnp.float32),
        "dw1_w": scale * jax.random.normal(ks[2], (K * K, out_channels), jnp.float32),
        "dw1_b": scale * jax.random.normal(ks[3], (1, out_channels), jnp.float32),
        "pw2_w": scale * jax.random.normal(ks[4], (in_channels, out_channels), jnp.float32),
        "pw2_b": scale * jax.random.normal(ks[5], (1, out_channels), jnp.float32),
        "dw2_w": scale * jax.random.normal(ks[6], (K * K, out_channels), jnp.float32),
        "dw2_b": scale * jax.random.normal(ks[7], (1, out_channels), jnp.float32),
    }


if __name__ == "__main__":
    N, Cin, Cout, H, W, K = 2, 4, 8, 16, 16, 3

    key = jax.random.PRNGKey(0)
    k_x, k_p = jax.random.split(key)
    x_nchw = jax.random.normal(k_x, (N, Cin, H, W), jnp.float32)   # PyTorch NCHW input
    params = init_params(k_p, Cin, Cout, K)

    out_nchw = spanconv(x_nchw, params, K)          # Pallas kernel (NCHW in / NCHW out)
    out_nchw = jax.block_until_ready(out_nchw)
    assert out_nchw.shape == (N, Cout, H, W)

    # Verify against the pure-JAX reference (computed in NHWC).
    x_nhwc = jnp.transpose(x_nchw, (0, 2, 3, 1))
    ref_nhwc = reference_spanconv(x_nhwc, params, K)
    out_nhwc = jnp.transpose(out_nchw, (0, 2, 3, 1))
    assert jnp.allclose(out_nhwc, ref_nhwc, atol=1e-4, rtol=1e-4), "mismatch vs reference"

    print("KERNEL_OK")
</pallas_src>

<mosaic_0001>
module attributes {stable_mosaic.version = 11 : i64} {
  func.func @spanconv_kernel(%arg0: i32, %arg1: memref<4x512xf32, #tpu.memory_space<vmem>>, %arg2: memref<9x8x4xf32, #tpu.memory_space<vmem>>, %arg3: memref<8x512xf32, #tpu.memory_space<vmem>>, %arg4: memref<2x512xi32, #tpu.memory_space<vmem>>, %arg5: memref<8x512xf32, #tpu.memory_space<vmem>>) attributes {dimension_semantics = [#tpu.dimension_semantics<parallel>], iteration_bounds = array<i64: 1>, scalar_prefetch = 0 : i64, scratch_operands = 0 : i64, tpu.core_type = #tpu.core_type<tc>, window_params = [{transform_indices = @transform_0, window_bounds = array<i64: 4, 512>}, {pipeline_mode = #tpu.pipeline_mode<synchronous>, transform_indices = @transform_1, window_bounds = array<i64: 9, 8, 4>}, {pipeline_mode = #tpu.pipeline_mode<synchronous>, transform_indices = @transform_2, window_bounds = array<i64: 8, 512>}, {pipeline_mode = #tpu.pipeline_mode<synchronous>, transform_indices = @transform_3, window_bounds = array<i64: 2, 512>}, {transform_indices = @transform_4, window_bounds = array<i64: 8, 512>}]} {
    %c0 = arith.constant 0 : index
    %c0_0 = arith.constant 0 : index
    %0 = vector.load %arg1[%c0, %c0_0] : memref<4x512xf32, #tpu.memory_space<vmem>>, vector<4x512xf32>
    %c0_1 = arith.constant 0 : index
    %c0_2 = arith.constant 0 : index
    %1 = vector.load %arg4[%c0_1, %c0_2] : memref<2x512xi32, #tpu.memory_space<vmem>>, vector<1x512xi32>
    %c1 = arith.constant 1 : index
    %c0_3 = arith.constant 0 : index
    %2 = vector.load %arg4[%c1, %c0_3] : memref<2x512xi32, #tpu.memory_space<vmem>>, vector<1x512xi32>
    %c1_i32 = arith.constant 1 : i32
    %3 = vector.broadcast %c1_i32 : i32 to vector<1x512xi32>
    %4 = arith.cmpi sge, %1, %3 : vector<1x512xi32>
    %c1_i32_4 = arith.constant 1 : i32
    %5 = vector.broadcast %c1_i32_4 : i32 to vector<1x512xi32>
    %6 = arith.cmpi sge, %2, %5 : vector<1x512xi32>
    %c15_i32 = arith.constant 15 : i32
    %7 = vector.broadcast %c15_i32 : i32 to vector<1x512xi32>
    %8 = arith.cmpi slt, %1, %7 : vector<1x512xi32>
    %c15_i32_5 = arith.constant 15 : i32
    %9 = vector.broadcast %c15_i32_5 : i32 to vector<1x512xi32>
    %10 = arith.cmpi slt, %2, %9 : vector<1x512xi32>
    %c0_6 = arith.constant 0 : index
    %c0_7 = arith.constant 0 : index
    %11 = vector.load %arg3[%c0_6, %c0_7] : memref<8x512xf32, #tpu.memory_space<vmem>>, vector<8x512xf32>
    %12 = vector.extract_strided_slice %0 {offsets = [0, 495], sizes = [4, 17], strides = [1, 1]} : vector<4x512xf32> to vector<4x17xf32>
    %13 = vector.extract_strided_slice %0 {offsets = [0, 0], sizes = [4, 495], strides = [1, 1]} : vector<4x512xf32> to vector<4x495xf32>
    %14 = tpu.concatenate %12, %13 in 1 : vector<4x17xf32>, vector<4x495xf32> -> vector<4x512xf32>
    %15 = arith.andi %4, %6 : vector<1x512xi1>
    %cst = arith.constant 0.000000e+00 : f32
    %16 = vector.broadcast %cst : f32 to vector<4x512xf32>
    %17 = vector.shape_cast %15 : vector<1x512xi1> to vector<1x512xi1>
    %18 = vector.broadcast %17 : vector<1x512xi1> to vector<4x512xi1>
    %19 = arith.select %18, %14, %16 : vector<4x512xi1>, vector<4x512xf32>
    %c0_8 = arith.constant 0 : index
    %c0_9 = arith.constant 0 : index
    %c0_10 = arith.constant 0 : index
    %20 = vector.load %arg2[%c0_8, %c0_9, %c0_10] : memref<9x8x4xf32, #tpu.memory_space<vmem>>, vector<1x8x4xf32>
    %21 = vector.shape_cast %20 : vector<1x8x4xf32> to vector<8x4xf32>
    %cst_11 = arith.constant dense<0.000000e+00> : vector<8x512xf32>
    %22 = tpu.matmul %21, %19, %cst_11 {dimension_numbers = #tpu.dot_dimension_numbers<[1], [0], [0], [1], [0, 0, 1, 1], [], []>} : vector<8x4xf32>, vector<4x512xf32>, vector<8x512xf32> -> vector<8x512xf32>
    %23 = arith.addf %11, %22 : vector<8x512xf32>
    %24 = vector.extract_strided_slice %0 {offsets = [0, 496], sizes = [4, 16], strides = [1, 1]} : vector<4x512xf32> to vector<4x16xf32>
    %25 = vector.extract_strided_slice %0 {offsets = [0, 0], sizes = [4, 496], strides = [1, 1]} : vector<4x512xf32> to vector<4x496xf32>
    %26 = tpu.concatenate %24, %25 in 1 : vector<4x16xf32>, vector<4x496xf32> -> vector<4x512xf32>
    %cst_12 = arith.constant 0.000000e+00 : f32
    %27 = vector.broadcast %cst_12 : f32 to vector<4x512xf32>
    %28 = vector.shape_cast %4 : vector<1x512xi1> to vector<1x512xi1>
    %29 = vector.broadcast %28 : vector<1x512xi1> to vector<4x512xi1>
    %30 = arith.select %29, %26, %27 : vector<4x512xi1>, vector<4x512xf32>
    %c1_13 = arith.constant 1 : index
    %c0_14 = arith.constant 0 : index
    %c0_15 = arith.constant 0 : index
    %31 = vector.load %arg2[%c1_13, %c0_14, %c0_15] : memref<9x8x4xf32, #tpu.memory_space<vmem>>, vector<1x8x4xf32>
    %32 = vector.shape_cast %31 : vector<1x8x4xf32> to vector<8x4xf32>
    %cst_16 = arith.constant dense<0.000000e+00> : vector<8x512xf32>
    %33 = tpu.matmul %32, %30, %cst_16 {dimension_numbers = #tpu.dot_dimension_numbers<[1], [0], [0], [1], [0, 0, 1, 1], [], []>} : vector<8x4xf32>, vector<4x512xf32>, vector<8x512xf32> -> vector<8x512xf32>
    %34 = arith.addf %23, %33 : vector<8x512xf32>
    %35 = vector.extract_strided_slice %0 {offsets = [0, 497], sizes = [4, 15], strides = [1, 1]} : vector<4x512xf32> to vector<4x15xf32>
    %36 = vector.extract_strided_slice %0 {offsets = [0, 0], sizes = [4, 497], strides = [1, 1]} : vector<4x512xf32> to vector<4x497xf32>
    %37 = tpu.concatenate %35, %36 in 1 : vector<4x15xf32>, vector<4x497xf32> -> vector<4x512xf32>
    %38 = arith.andi %4, %10 : vector<1x512xi1>
    %cst_17 = arith.constant 0.000000e+00 : f32
    %39 = vector.broadcast %cst_17 : f32 to vector<4x512xf32>
    %40 = vector.shape_cast %38 : vector<1x512xi1> to vector<1x512xi1>
    %41 = vector.broadcast %40 : vector<1x512xi1> to vector<4x512xi1>
    %42 = arith.select %41, %37, %39 : vector<4x512xi1>, vector<4x512xf32>
    %c2 = arith.constant 2 : index
    %c0_18 = arith.constant 0 : index
    %c0_19 = arith.constant 0 : index
    %43 = vector.load %arg2[%c2, %c0_18, %c0_19] : memref<9x8x4xf32, #tpu.memory_space<vmem>>, vector<1x8x4xf32>
    %44 = vector.shape_cast %43 : vector<1x8x4xf32> to vector<8x4xf32>
    %cst_20 = arith.constant dense<0.000000e+00> : vector<8x512xf32>
    %45 = tpu.matmul %44, %42, %cst_20 {dimension_numbers = #tpu.dot_dimension_numbers<[1], [0], [0], [1], [0, 0, 1, 1], [], []>} : vector<8x4xf32>, vector<4x512xf32>, vector<8x512xf32> -> vector<8x512xf32>
    %46 = arith.addf %34, %45 : vector<8x512xf32>
    %47 = vector.extract_strided_slice %0 {offsets = [0, 511], sizes = [4, 1], strides = [1, 1]} : vector<4x512xf32> to vector<4x1xf32>
    %48 = vector.extract_strided_slice %0 {offsets = [0, 0], sizes = [4, 511], strides = [1, 1]} : vector<4x512xf32> to vector<4x511xf32>
    %49 = tpu.concatenate %47, %48 in 1 : vector<4x1xf32>, vector<4x511xf32> -> vector<4x512xf32>
    %cst_21 = arith.constant 0.000000e+00 : f32
    %50 = vector.broadcast %cst_21 : f32 to vector<4x512xf32>
    %51 = vector.shape_cast %6 : vector<1x512xi1> to vector<1x512xi1>
    %52 = vector.broadcast %51 : vector<1x512xi1> to vector<4x512xi1>
    %53 = arith.select %52, %49, %50 : vector<4x512xi1>, vector<4x512xf32>
    %c3 = arith.constant 3 : index
    %c0_22 = arith.constant 0 : index
    %c0_23 = arith.constant 0 : index
    %54 = vector.load %arg2[%c3, %c0_22, %c0_23] : memref<9x8x4xf32, #tpu.memory_space<vmem>>, vector<1x8x4xf32>
    %55 = vector.shape_cast %54 : vector<1x8x4xf32> to vector<8x4xf32>
    %cst_24 = arith.constant dense<0.000000e+00> : vector<8x512xf32>
    %56 = tpu.matmul %55, %53, %cst_24 {dimension_numbers = #tpu.dot_dimension_numbers<[1], [0], [0], [1], [0, 0, 1, 1], [], []>} : vector<8x4xf32>, vector<4x512xf32>, vector<8x512xf32> -> vector<8x512xf32>
    %57 = arith.addf %46, %56 : vector<8x512xf32>
    %c4 = arith.constant 4 : index
    %c0_25 = arith.constant 0 : index
    %c0_26 = arith.constant 0 : index
    %58 = vector.load %arg2[%c4, %c0_25, %c0_26] : memref<9x8x4xf32, #tpu.memory_space<vmem>>, vector<1x8x4xf32>
    %59 = vector.shape_cast %58 : vector<1x8x4xf32> to vector<8x4xf32>
    %cst_27 = arith.constant dense<0.000000e+00> : vector<8x512xf32>
    %60 = tpu.matmul %59, %0, %cst_27 {dimension_numbers = #tpu.dot_dimension_numbers<[1], [0], [0], [1], [0, 0, 1, 1], [], []>} : vector<8x4xf32>, vector<4x512xf32>, vector<8x512xf32> -> vector<8x512xf32>
    %61 = arith.addf %57, %60 : vector<8x512xf32>
    %62 = vector.extract_strided_slice %0 {offsets = [0, 1], sizes = [4, 511], strides = [1, 1]} : vector<4x512xf32> to vector<4x511xf32>
    %63 = vector.extract_strided_slice %0 {offsets = [0, 0], sizes = [4, 1], strides = [1, 1]} : vector<4x512xf32> to vector<4x1xf32>
    %64 = tpu.concatenate %62, %63 in 1 : vector<4x511xf32>, vector<4x1xf32> -> vector<4x512xf32>
    %cst_28 = arith.constant 0.000000e+00 : f32
    %65 = vector.broadcast %cst_28 : f32 to vector<4x512xf32>
    %66 = vector.shape_cast %10 : vector<1x512xi1> to vector<1x512xi1>
    %67 = vector.broadcast %66 : vector<1x512xi1> to vector<4x512xi1>
    %68 = arith.select %67, %64, %65 : vector<4x512xi1>, vector<4x512xf32>
    %c5 = arith.constant 5 : index
    %c0_29 = arith.constant 0 : index
    %c0_30 = arith.constant 0 : index
    %69 = vector.load %arg2[%c5, %c0_29, %c0_30] : memref<9x8x4xf32, #tpu.memory_space<vmem>>, vector<1x8x4xf32>
    %70 = vector.shape_cast %69 : vector<1x8x4xf32> to vector<8x4xf32>
    %cst_31 = arith.constant dense<0.000000e+00> : vector<8x512xf32>
    %71 = tpu.matmul %70, %68, %cst_31 {dimension_numbers = #tpu.dot_dimension_numbers<[1], [0], [0], [1], [0, 0, 1, 1], [], []>} : vector<8x4xf32>, vector<4x512xf32>, vector<8x512xf32> -> vector<8x512xf32>
    %72 = arith.addf %61, %71 : vector<8x512xf32>
    %73 = vector.extract_strided_slice %0 {offsets = [0, 15], sizes = [4, 497], strides = [1, 1]} : vector<4x512xf32> to vector<4x497xf32>
    %74 = vector.extract_strided_slice %0 {offsets = [0, 0], sizes = [4, 15], strides = [1, 1]} : vector<4x512xf32> to vector<4x15xf32>
    %75 = tpu.concatenate %73, %74 in 1 : vector<4x497xf32>, vector<4x15xf32> -> vector<4x512xf32>
    %76 = arith.andi %8, %6 : vector<1x512xi1>
    %cst_32 = arith.constant 0.000000e+00 : f32
    %77 = vector.broadcast %cst_32 : f32 to vector<4x512xf32>
    %78 = vector.shape_cast %76 : vector<1x512xi1> to vector<1x512xi1>
    %79 = vector.broadcast %78 : vector<1x512xi1> to vector<4x512xi1>
    %80 = arith.select %79, %75, %77 : vector<4x512xi1>, vector<4x512xf32>
    %c6 = arith.constant 6 : index
    %c0_33 = arith.constant 0 : index
    %c0_34 = arith.constant 0 : index
    %81 = vector.load %arg2[%c6, %c0_33, %c0_34] : memref<9x8x4xf32, #tpu.memory_space<vmem>>, vector<1x8x4xf32>
    %82 = vector.shape_cast %81 : vector<1x8x4xf32> to vector<8x4xf32>
    %cst_35 = arith.constant dense<0.000000e+00> : vector<8x512xf32>
    %83 = tpu.matmul %82, %80, %cst_35 {dimension_numbers = #tpu.dot_dimension_numbers<[1], [0], [0], [1], [0, 0, 1, 1], [], []>} : vector<8x4xf32>, vector<4x512xf32>, vector<8x512xf32> -> vector<8x512xf32>
    %84 = arith.addf %72, %83 : vector<8x512xf32>
    %85 = vector.extract_strided_slice %0 {offsets = [0, 16], sizes = [4, 496], strides = [1, 1]} : vector<4x512xf32> to vector<4x496xf32>
    %86 = vector.extract_strided_slice %0 {offsets = [0, 0], sizes = [4, 16], strides = [1, 1]} : vector<4x512xf32> to vector<4x16xf32>
    %87 = tpu.concatenate %85, %86 in 1 : vector<4x496xf32>, vector<4x16xf32> -> vector<4x512xf32>
    %cst_36 = arith.constant 0.000000e+00 : f32
    %88 = vector.broadcast %cst_36 : f32 to vector<4x512xf32>
    %89 = vector.shape_cast %8 : vector<1x512xi1> to vector<1x512xi1>
    %90 = vector.broadcast %89 : vector<1x512xi1> to vector<4x512xi1>
    %91 = arith.select %90, %87, %88 : vector<4x512xi1>, vector<4x512xf32>
    %c7 = arith.constant 7 : index
    %c0_37 = arith.constant 0 : index
    %c0_38 = arith.constant 0 : index
    %92 = vector.load %arg2[%c7, %c0_37, %c0_38] : memref<9x8x4xf32, #tpu.memory_space<vmem>>, vector<1x8x4xf32>
    %93 = vector.shape_cast %92 : vector<1x8x4xf32> to vector<8x4xf32>
    %cst_39 = arith.constant dense<0.000000e+00> : vector<8x512xf32>
    %94 = tpu.matmul %93, %91, %cst_39 {dimension_numbers = #tpu.dot_dimension_numbers<[1], [0], [0], [1], [0, 0, 1, 1], [], []>} : vector<8x4xf32>, vector<4x512xf32>, vector<8x512xf32> -> vector<8x512xf32>
    %95 = arith.addf %84, %94 : vector<8x512xf32>
    %96 = vector.extract_strided_slice %0 {offsets = [0, 17], sizes = [4, 495], strides = [1, 1]} : vector<4x512xf32> to vector<4x495xf32>
    %97 = vector.extract_strided_slice %0 {offsets = [0, 0], sizes = [4, 17], strides = [1, 1]} : vector<4x512xf32> to vector<4x17xf32>
    %98 = tpu.concatenate %96, %97 in 1 : vector<4x495xf32>, vector<4x17xf32> -> vector<4x512xf32>
    %99 = arith.andi %8, %10 : vector<1x512xi1>
    %cst_40 = arith.constant 0.000000e+00 : f32
    %100 = vector.broadcast %cst_40 : f32 to vector<4x512xf32>
    %101 = vector.shape_cast %99 : vector<1x512xi1> to vector<1x512xi1>
    %102 = vector.broadcast %101 : vector<1x512xi1> to vector<4x512xi1>
    %103 = arith.select %102, %98, %100 : vector<4x512xi1>, vector<4x512xf32>
    %c8 = arith.constant 8 : index
    %c0_41 = arith.constant 0 : index
    %c0_42 = arith.constant 0 : index
    %104 = vector.load %arg2[%c8, %c0_41, %c0_42] : memref<9x8x4xf32, #tpu.memory_space<vmem>>, vector<1x8x4xf32>
    %105 = vector.shape_cast %104 : vector<1x8x4xf32> to vector<8x4xf32>
    %cst_43 = arith.constant dense<0.000000e+00> : vector<8x512xf32>
    %106 = tpu.matmul %105, %103, %cst_43 {dimension_numbers = #tpu.dot_dimension_numbers<[1], [0], [0], [1], [0, 0, 1, 1], [], []>} : vector<8x4xf32>, vector<4x512xf32>, vector<8x512xf32> -> vector<8x512xf32>
    %107 = arith.addf %95, %106 : vector<8x512xf32>
    %c0_44 = arith.constant 0 : index
    %c0_45 = arith.constant 0 : index
    %108 = vector.load %arg5[%c0_44, %c0_45] : memref<8x512xf32, #tpu.memory_space<vmem>>, vector<8x512xf32>
    tpu.vector_store %arg5[%c0_44, %c0_45], %107 {strides = array<i32>} : memref<8x512xf32, #tpu.memory_space<vmem>>, vector<8x512xf32>,
    return
  }
  func.func @transform_0(%arg0: i32) -> (i32, i32) {
    %c0_i32 = arith.constant 0 : i32
    %c0_i32_0 = arith.constant 0 : i32
    return %c0_i32, %arg0 : i32, i32
  }
  func.func @transform_1(%arg0: i32) -> (i32, i32, i32) {
    %c0_i32 = arith.constant 0 : i32
    %c0_i32_0 = arith.constant 0 : i32
    %c0_i32_1 = arith.constant 0 : i32
    %c0_i32_2 = arith.constant 0 : i32
    return %c0_i32, %c0_i32_0, %c0_i32_1 : i32, i32, i32
  }
  func.func @transform_2(%arg0: i32) -> (i32, i32) {
    %c0_i32 = arith.constant 0 : i32
    %c0_i32_0 = arith.constant 0 : i32
    %c0_i32_1 = arith.constant 0 : i32
    return %c0_i32, %c0_i32_0 : i32, i32
  }
  func.func @transform_3(%arg0: i32) -> (i32, i32) {
    %c0_i32 = arith.constant 0 : i32
    %c0_i32_0 = arith.constant 0 : i32
    %c0_i32_1 = arith.constant 0 : i32
    return %c0_i32, %c0_i32_0 : i32, i32
  }
  func.func @transform_4(%arg0: i32) -> (i32, i32) {
    %c0_i32 = arith.constant 0 : i32
    %c0_i32_0 = arith.constant 0 : i32
    return %c0_i32, %arg0 : i32, i32
  }
}

</mosaic_0001>

<bundles_post_ra>
// kernel: tpu_custom_call.1
= control target key start
LH: loop header
LB: loop body
LE: loop exit
PB: predicated region body
PF: predicated region fallthrough
CT: control target
= control target key end

     0   :  { %s1849_s0 = inlined_call_operand.vmem [shape: f32[4,512], index: 0, kind: input, shape index: {}]   ;;  %s1850_s1 = inlined_call_operand.vmem [shape: f32[9,8,4], index: 1, kind: input, shape index: {}]   ;;  %s1851_s2 = inlined_call_operand.vmem [shape: f32[8,512], index: 2, kind: input, shape index: {}]   ;;  %s1852_s3 = inlined_call_operand.vmem [shape: s32[2,512], index: 3, kind: input, shape index: {}]   ;;  %s1853_s4 = inlined_call_operand.hbm [shape: f32[8,512], index: 4, kind: output, shape index: {}]  }
   0x1   :  { %v1461_v0 = vld [vmem:[%s1849_s0 + $0x8] sm:$0xff] }
   0x2   :  { %9 = vsyncpa [#allocation3], 0  ;;  %40 = vst [vmem:[#allocation1 + $0x10] ss:$2 sm:$0xff] %v1461_v0  ;;  %v1468_v1 = vld [vmem:[%s1849_s0] sm:$0xff]  ;;  %s1423_s19 = smov 17  }
   0x3   :  { %32 = vst [vmem:[#allocation1] ss:$2 sm:$0xff] %v1461_v0  ;;  %s1424_s0 = smov 16   ;;  %s1425_s20 = smov 1   ;;  %v1430_v45 = vmov 0   ;;  %vm53_vm3 = vcmask 138240  }
   0x4   :  { %s1426_s21 = smov 15   ;;  %s1427_s22 = smov 127   ;;  %v1527_v41 = vld [vmem:[%s1852_s3] ss:$2 sm:$0xf]  ;;  %vm81_vm5 = vcmask 1043456  }
   0x5   :  { %s1428_s23 = smov 113   ;;  %s1429_s24 = smov 112   ;;  %v1532_v42 = vld [vmem:[%s1852_s3 + $0x1] ss:$2 sm:$0xf]  ;;  %vm23_vm0 = vcmp.ge.s32.totalorder %v1527_v41, 1 }
   0x6   :  { %vm24_vm1 = vcmp.ge.s32.totalorder %v1532_v42, 1  ;;  %s1431_s29 = smov 111   ;;  %v76_v54 = vld [vmem:[%s1850_s1] sm:$0xff]  ;;  %vm77_vm6 = vcmask 31744   ;;  %vm26_vm10 = vcmp.lt.s32.totalorder %v1532_v42, 15  ;;  %vm198_vm11 = vcmask 130048  }
   0x7   :  { %vm62_vm2 = vmand %vm23_vm0, %vm24_vm1  ;;  %vm485_vm15 = vcmask 7168   ;;  %v1342_v62 = vld [vmem:[%s1850_s1 + $0x20] sm:$0xff]  ;;  %s1297_s3 = sshll.u32 %s1853_s4, 4  ;;  %s1298_s3 = int_to_ptr.hbm [resolvable:$true] %s1297_s3 }
   0x8   :  { %v63_v46 = vsel %vm62_vm2, 1, %v1430_v45  ;;  %vm350_vm12 = vmand %vm23_vm0, %vm26_vm10 }
   0x9   :  { %v43_v2 = vld.sshfl [vmem:[#allocation1 + $0x10] sm:$0xff pattern:$0x75316420]  ;;  %v44_v3 = vld.sshfl [vmem:[#allocation1 + $0x18] sm:$0xff pattern:$0x75316420] }
   0xa   :  { %49 = vrot.lane.b32.xlu0 %v43_v2, %s1423_s19  ;;  %51 = vrot.lane.b32.xlu1 %v44_v3, %s1423_s19  ;;  %185 = vst [vmem:[#allocation1 + $0x10] ss:$2 sm:$0xff] %v1461_v0  ;;  %v33_v4 = vld.sshfl [vmem:[#allocation1 + $0x8] sm:$0xff pattern:$0x75316420]  ;;  %v67_v48 = vperm.slane %v63_v46, 3 }
   0xb   :  { %38 = vst [vmem:[#allocation1] ss:$2 sm:$0xff] %v1468_v1  ;;  %v66_v55 = vperm.slane %v63_v46, 2  ;;  %v65_v56 = vperm.slane %v63_v46, 1  ;;  %v64_v61 = vperm.slane %v63_v46, 0  ;;  %v207_v2 = vsel %vm23_vm0, 1, %v1430_v45 }
   0xc   :  { %vm71_vm4 = vcmp.eq.s32.totalorder %v67_v48, 1 }
   0xd   :  { %vm70_vm7 = vcmp.eq.s32.totalorder %v66_v55, 1  ;;  %vm1557_vm8 = vcmp.eq.s32.totalorder %v65_v56, 1  ;;  %vm68_vm9 = vcmp.eq.s32.totalorder %v64_v61, 1 }
  0x11   :  { %v188_v5 = vld.sshfl [vmem:[#allocation1 + $0x10] sm:$0xff pattern:$0x75316420]  ;;  %v189_v6 = vld.sshfl [vmem:[#allocation1 + $0x18] sm:$0xff pattern:$0x75316420] }
  0x12   :  { %v42_v7 = vld.sshfl [vmem:[#allocation1 + $0x8] sm:$0xff pattern:$0x75316420]  ;;  %34 = vrot.lane.b32.xlu1 %v33_v4, %s1423_s19  ;;  %328 = vst [vmem:[#allocation1 + $0x10] ss:$2 sm:$0xff] %v1461_v0 }
  0x13   :  { %47 = vrot.lane.b32.xlu0 %v42_v7, %s1423_s19  ;;  %v41_v8 = vld.sshfl [vmem:[#allocation1] sm:$0xff pattern:$0x75316420] }
  0x14   :  { %45 = vrot.lane.b32.xlu2 %v41_v8, %s1423_s19  ;;  %178 = vst [vmem:[#allocation1] ss:$2 sm:$0xff] %v1461_v0  ;;  %v210_v8 = vperm.slane %v207_v2, 2 }
  0x16   :  { %vm214_vm13 = vcmp.eq.s32.totalorder %v210_v8, 1 }
  0x19   :  { %v331_v9 = vld.sshfl [vmem:[#allocation1 + $0x10] sm:$0xff pattern:$0x75316420]  ;;  %v332_v10 = vld.sshfl [vmem:[#allocation1 + $0x18] sm:$0xff pattern:$0x75316420] }
  0x1a   :  { %196 = vrot.lane.b32.xlu1 %v189_v6, %s1424_s0  ;;  %472 = vst [vmem:[#allocation1 + $0x10] ss:$2 sm:$0xff] %v1461_v0 }
  0x1b   :  { %194 = vrot.lane.b32.xlu0 %v188_v5, %s1424_s0  ;;  %v179_v11 = vld.sshfl [vmem:[#allocation1 + $0x8] sm:$0xff pattern:$0x75316420] }
  0x1c   :  { %183 = vst [vmem:[#allocation1] ss:$2 sm:$0xff] %v1468_v1  ;;  %180 = vrot.lane.b32.xlu2 %v179_v11, %s1424_s0 }
  0x21   :  { %v475_v12 = vld.sshfl [vmem:[#allocation1 + $0x10] sm:$0xff pattern:$0x75316420]  ;;  %v476_v13 = vld.sshfl [vmem:[#allocation1 + $0x18] sm:$0xff pattern:$0x75316420] }
  0x22   :  { %612 = vst [vmem:[#allocation1 + $0x10] ss:$2 sm:$0xff] %v1461_v0  ;;  %481 = vrot.lane.b32.xlu1 %v475_v12, %s1425_s20  ;;  %v1587_v12 = vsel %vm24_vm1, 1, %v1430_v45 }
  0x23   :  { %339 = vrot.lane.b32.xlu0 %v332_v10, %s1426_s21  ;;  %v186_v14 = vld.sshfl [vmem:[#allocation1] sm:$0xff pattern:$0x75316420]  ;;  %v187_v15 = vld.sshfl [vmem:[#allocation1 + $0x8] sm:$0xff pattern:$0x75316420] }
  0x24   :  { %321 = vst [vmem:[#allocation1] ss:$2 sm:$0xff] %v1461_v0  ;;  %337 = vrot.lane.b32.xlu2 %v331_v9, %s1426_s21  ;;  %v211_v10 = vperm.slane %v207_v2, 3 }
  0x26   :  { %vm215_vm14 = vcmp.eq.s32.totalorder %v211_v10, 1 }
  0x29   :  { %v1481_v16 = vld.sshfl [vmem:[#allocation1 + $0x10] sm:$0xff pattern:$0x75316420]  ;;  %v1483_v17 = vld.sshfl [vmem:[#allocation1 + $0x18] sm:$0xff pattern:$0x75316420] }
  0x2a   :  { %714 = vst [vmem:[#allocation1 + $0x10] ss:$2 sm:$0xff] %v1461_v0 }
  0x2b   :  { %190 = vrot.lane.b32.xlu0 %v186_v14, %s1424_s0  ;;  %v322_v18 = vld.sshfl [vmem:[#allocation1 + $0x8] sm:$0xff pattern:$0x75316420] }
  0x2c   :  { %323 = vrot.lane.b32.xlu1 %v322_v18, %s1426_s21  ;;  %326 = vst [vmem:[#allocation1] ss:$2 sm:$0xff] %v1468_v1  ;;  %192 = vrot.lane.b32.xlu2 %v187_v15, %s1424_s0  ;;  %v1315_v18 = vld [vmem:[%s1850_s1 + $0x8] sm:$0xff] }
  0x31   :  { %v717_v19 = vld.sshfl [vmem:[#allocation1 + $0x10] sm:$0xff pattern:$0x75316420]  ;;  %v718_v20 = vld.sshfl [vmem:[#allocation1 + $0x18] sm:$0xff pattern:$0x75316420] }
  0x32   :  { %857 = vst [vmem:[#allocation1 + $0x10] ss:$2 sm:$0xff] %v1461_v0 }
  0x33   :  { %725 = vrot.lane.b32.xlu0 %v718_v20, %s1427_s22  ;;  %v330_v21 = vld.sshfl [vmem:[#allocation1 + $0x8] sm:$0xff pattern:$0x75316420]  ;;  %v329_v22 = vld.sshfl [vmem:[#allocation1] sm:$0xff pattern:$0x75316420] }
  0x34   :  { %335 = vrot.lane.b32.xlu1 %v330_v21, %s1426_s21  ;;  %465 = vst [vmem:[#allocation1] ss:$2 sm:$0xff] %v1461_v0  ;;  %483 = vrot.lane.b32.xlu2 %v476_v13, %s1425_s20  ;;  %v498_v20 = vperm.slane %v1587_v12, 3 }
  0x36   :  { %vm1601_vm0 = vcmp.eq.s32.totalorder %v498_v20, 1 }
  0x39   :  { %v860_v23 = vld.sshfl [vmem:[#allocation1 + $0x10] sm:$0xff pattern:$0x75316420]  ;;  %v861_v24 = vld.sshfl [vmem:[#allocation1 + $0x18] sm:$0xff pattern:$0x75316420] }
  0x3a   :  { %1001 = vst [vmem:[#allocation1 + $0x10] ss:$2 sm:$0xff] %v1461_v0 }
  0x3b   :  { %v466_v25 = vld.sshfl [vmem:[#allocation1 + $0x8] sm:$0xff pattern:$0x75316420] }
  0x3c   :  { %467 = vrot.lane.b32.xlu0 %v466_v25, %s1425_s20  ;;  %470 = vst [vmem:[#allocation1] ss:$2 sm:$0xff] %v1468_v1  ;;  %866 = vrot.lane.b32.xlu1 %v860_v23, %s1428_s23 }
  0x3d   :  { %333 = vrot.lane.b32.xlu2 %v329_v22, %s1426_s21 }
  0x41   :  { %v1004_v26 = vld.sshfl [vmem:[#allocation1 + $0x10] sm:$0xff pattern:$0x75316420]  ;;  %v1005_v27 = vld.sshfl [vmem:[#allocation1 + $0x18] sm:$0xff pattern:$0x75316420] }
  0x42   :  { %1144 = vst [vmem:[#allocation1 + $0x10] ss:$2 sm:$0xff] %v1461_v0 }
  0x43   :  { %v474_v28 = vld.sshfl [vmem:[#allocation1 + $0x8] sm:$0xff pattern:$0x75316420]  ;;  %v473_v29 = vld.sshfl [vmem:[#allocation1] sm:$0xff pattern:$0x75316420] }
  0x44   :  { %479 = vrot.lane.b32.xlu0 %v474_v28, %s1425_s20  ;;  %477 = vrot.lane.b32.xlu1 %v473_v29, %s1425_s20  ;;  %610 = vst [vmem:[#allocation1] ss:$2 sm:$0xff] %v1468_v1 }
  0x45   :  { %723 = vrot.lane.b32.xlu2 %v717_v19, %s1427_s22  ;;  %v351_v19 = vsel %vm350_vm12, 1, %v1430_v45 }
  0x49   :  { %v1148_v44 = vld.sshfl [vmem:[#allocation1 + $0x18] sm:$0xff pattern:$0x75316420]  ;;  %v1147_v57 = vld.sshfl [vmem:[#allocation1 + $0x10] sm:$0xff pattern:$0x75316420] }
  0x4b   :  { %v1503_v30 = vld.sshfl [vmem:[#allocation1] sm:$0xff pattern:$0x75316420]  ;;  %v1505_v31 = vld.sshfl [vmem:[#allocation1 + $0x8] sm:$0xff pattern:$0x75316420] }
  0x4c   :  { %712 = vst [vmem:[#allocation1] ss:$2 sm:$0xff] %v1468_v1  ;;  %1010 = vrot.lane.b32.xlu0 %v1004_v26, %s1429_s24  ;;  %1012 = vrot.lane.b32.xlu1 %v1005_v27, %s1429_s24 }
  0x4d   :  { %868 = vrot.lane.b32.xlu2 %v861_v24, %s1428_s23  ;;  %v355_v24 = vperm.slane %v351_v19, 3 }
  0x4f   :  { %vm359_vm2 = vcmp.eq.s32.totalorder %v355_v24, 1 }
  0x53   :  { %v716_v32 = vld.sshfl [vmem:[#allocation1 + $0x8] sm:$0xff pattern:$0x75316420]  ;;  %v715_v33 = vld.sshfl [vmem:[#allocation1] sm:$0xff pattern:$0x75316420] }
  0x54   :  { %721 = vrot.lane.b32.xlu0 %v716_v32, %s1427_s22  ;;  %735 = vst [vmem:[#allocation1] ss:$2 sm:$0xff] %v1468_v1 }
  0x55   :  { %719 = vrot.lane.b32.xlu2 %v715_v33, %s1427_s22 }
  0x5b   :  { %v736_v34 = vld.sshfl [vmem:[#allocation1] sm:$0xff pattern:$0x75316420] }
  0x5c   :  { %737 = vrot.lane.b32.xlu1 %v736_v34, %s1427_s22  ;;  %855 = vst [vmem:[#allocation1] ss:$2 sm:$0xff] %v1468_v1  ;;  %v208_v34 = vperm.slane %v207_v2, 0 }
  0x63   :  { %v858_v35 = vld.sshfl [vmem:[#allocation1] sm:$0xff pattern:$0x75316420]  ;;  %v859_v36 = vld.sshfl [vmem:[#allocation1 + $0x8] sm:$0xff pattern:$0x75316420] }
  0x64   :  { %862 = vrot.lane.b32.xlu1 %v858_v35, %s1428_s23  ;;  %878 = vst [vmem:[#allocation1] ss:$2 sm:$0xff] %v1468_v1  ;;  %864 = vrot.lane.b32.xlu2 %v859_v36, %s1428_s23  ;;  %v209_v35 = vperm.slane %v207_v2, 1  ;;  %v352_v36 = vperm.slane %v351_v19, 0  ;;  %v1671_v2 = vsel %vm26_vm10, 1, %v1430_v45 }
  0x66   :  { %vm1630_vm12 = vcmp.eq.s32.totalorder %v352_v36, 1 }
  0x6b   :  { %v879_v37 = vld.sshfl [vmem:[#allocation1] sm:$0xff pattern:$0x75316420] }
  0x6c   :  { %880 = vrot.lane.b32.xlu0 %v879_v37, %s1428_s23  ;;  %999 = vst [vmem:[#allocation1] ss:$2 sm:$0xff] %v1468_v1 }
  0x6e   :  { %v46_v38 = vpop.permute.xlu2 %45 }
  0x73   :  { %v1003_v39 = vld.sshfl [vmem:[#allocation1 + $0x8] sm:$0xff pattern:$0x75316420]  ;;  %v1002_v40 = vld.sshfl [vmem:[#allocation1] sm:$0xff pattern:$0x75316420] }
  0x74   :  { %1008 = vrot.lane.b32.xlu1 %v1003_v39, %s1429_s24  ;;  %1006 = vrot.lane.b32.xlu0 %v1002_v40, %s1429_s24  ;;  %1022 = vst [vmem:[#allocation1] ss:$2 sm:$0xff] %v1468_v1 }
  0x76   :  { %v1534_v43 = vpop.permute.xlu2 %180 }
  0x7b   :  { %v1023_v47 = vld.sshfl [vmem:[#allocation1] sm:$0xff pattern:$0x75316420] }
  0x7c   :  { %1155 = vrot.lane.b32.xlu0 %v1148_v44, %s1431_s29  ;;  %v50_v49 = vpop.permute.xlu0 %49  ;;  %1024 = vrot.lane.b32.xlu2 %v1023_v47, %s1429_s24  ;;  %1142 = vst [vmem:[#allocation1] ss:$2 sm:$0xff] %v1468_v1  ;;  %v52_v50 = vpop.permute.xlu1 %51 }
  0x7d   :  { %v56_v51 = vsel %vm53_vm3, %v50_v49, %v52_v50 }
  0x7e   :  { %v1547_v52 = vpop.permute.xlu2 %337  ;;  %v75_v53 = vsel %vm71_vm4, %v56_v51, 0.0  ;;  %vm25_vm4 = vcmp.lt.s32.totalorder %v1527_v41, 15 }
  0x7f   :  { %1313 = vmatpush.msk.msra.mxu3 %vm81_vm5, %v75_v53  ;;  %v354_v53 = vperm.slane %v351_v19, 2 }
  0x80   :  { %1314 = vmatmul.msk.f32.vlgmr.msra.gmra.mxu3 %vm77_vm6, %v76_v54 }
  0x83   :  { %v1146_v58 = vld.sshfl [vmem:[#allocation1 + $0x8] sm:$0xff pattern:$0x75316420]  ;;  %v1145_v59 = vld.sshfl [vmem:[#allocation1] sm:$0xff pattern:$0x75316420] }
  0x84   :  { %1151 = vrot.lane.b32.xlu0 %v1146_v58, %s1431_s29  ;;  %1165 = vst [vmem:[#allocation1] ss:$2 sm:$0xff] %v1468_v1  ;;  %v35_v60 = vpop.permute.xlu1 %34  ;;  %1153 = vrot.lane.b32.xlu2 %v1147_v57, %s1431_s29 }
  0x85   :  { %v48_v63 = vpop.permute.xlu0 %47  ;;  %v61_v0 = vsel %vm53_vm3, %v35_v60, %v46_v38 }
  0x86   :  { %v1565_v3 = vpop.permute.xlu2 %192  ;;  %v55_v1 = vsel %vm53_vm3, %v48_v63, %v50_v49  ;;  %v54_v4 = vsel %vm53_vm3, %v46_v38, %v48_v63  ;;  %v72_v6 = vsel %vm68_vm9, %v61_v0, 0.0  ;;  %vm341_vm3 = vcmask 121856   ;;  %v1324_v38 = vld [vmem:[%s1850_s1 + $0x10] sm:$0xff] }
  0x87   :  { %v74_v5 = vsel %vm70_vm7, %v55_v1, 0.0  ;;  %v73_v7 = vsel %vm1557_vm8, %v54_v4, 0.0  ;;  %1307 = vmatpush.msk.msra.mxu0 %vm81_vm5, %v72_v6  ;;  %vm1624_vm7 = vmand %vm25_vm4, %vm24_vm1  ;;  %vm212_vm8 = vcmp.eq.s32.totalorder %v208_v34, 1  ;;  %vm213_vm9 = vcmp.eq.s32.totalorder %v209_v35, 1 }
  0x88   :  { %1311 = vmatpush.msk.msra.mxu2 %vm81_vm5, %v74_v5  ;;  %1309 = vmatpush.msk.msra.mxu1 %vm81_vm5, %v73_v7  ;;  %vm358_vm1 = vcmp.eq.s32.totalorder %v354_v53, 1  ;;  %v495_v1 = vperm.slane %v1587_v12, 0  ;;  %v496_v4 = vperm.slane %v1587_v12, 1  ;;  %v744_v5 = vperm.slane %v1671_v2, 2 }
  0x89   :  { %1312 = vmatmul.msk.f32.vlgmr.msra.gmra.mxu2 %vm77_vm6, %v76_v54  ;;  %1308 = vmatmul.msk.f32.vlgmr.msra.gmra.mxu0 %vm77_vm6, %v76_v54 }
  0x8a   :  { %1310 = vmatmul.msk.f32.vlgmr.msra.gmra.mxu1 %vm77_vm6, %v76_v54  ;;  %v353_v54 = vperm.slane %v351_v19, 1 }
  0x8b   :  { %v1166_v9 = vld.sshfl [vmem:[#allocation1] sm:$0xff pattern:$0x75316420] }
  0x8c   :  { %1167 = vrot.lane.b32.xlu1 %v1166_v9, %s1431_s29  ;;  %v197_v11 = vpop.permute.xlu1 %196  ;;  %1149 = vrot.lane.b32.xlu2 %v1145_v59, %s1431_s29 }
  0x8d   :  { %v195_v13 = vpop.permute.xlu0 %194 }
  0x8e   :  { %v201_v14 = vsel %vm198_vm11, %v195_v13, %v197_v11  ;;  %v200_v15 = vsel %vm198_vm11, %v1565_v3, %v195_v13  ;;  %v484_v21 = vpop.permute.xlu2 %483 }
  0x8f   :  { %v218_v22 = vsel %vm214_vm13, %v200_v15, 0.0  ;;  %v219_v23 = vsel %vm215_vm14, %v201_v14, 0.0  ;;  %vm727_vm13 = vcmask 1039360  }
  0x90   :  { %1320 = vmatpush.msk.msrb.mxu2 %vm81_vm5, %v218_v22  ;;  %1322 = vmatpush.msk.msrb.mxu3 %vm81_vm5, %v219_v23 }
  0x91   :  { %1321 = vmatmul.msk.f32.vlgmr.msrb.gmra.mxu2 %vm77_vm6, %v1315_v18  ;;  %1323 = vmatmul.msk.f32.vlgmr.msrb.gmra.mxu3 %vm77_vm6, %v1315_v18 }
  0x94   :  { %v1605_v26 = vpop.permute.xlu1 %481 }
  0x95   :  { %v340_v27 = vpop.permute.xlu0 %339  ;;  %v488_v28 = vsel %vm485_vm15, %v1605_v26, %v484_v21 }
  0x96   :  { %v344_v29 = vsel %vm341_vm3, %v1547_v52, %v340_v27  ;;  %v506_v32 = vsel %vm1601_vm0, %v488_v28, 0.0  ;;  %vm1681_vm0 = vcmp.eq.s32.totalorder %v495_v1, 1  ;;  %v1738_v27 = vsel %vm25_vm4, 1, %v1430_v45 }
  0x97   :  { %v363_v33 = vsel %vm359_vm2, %v344_v29, 0.0  ;;  %v334_v37 = vpop.permute.xlu2 %333  ;;  %vm1685_vm2 = vcmp.eq.s32.totalorder %v496_v4, 1  ;;  %v1030_v4 = vperm.slane %v1738_v27, 1 }
  0x98   :  { %1331 = vmatpush.msk.msra.mxu3 %vm81_vm5, %v363_v33  ;;  %v742_v33 = vperm.slane %v1671_v2, 0 }
  0x99   :  { %1332 = vmatmul.msk.f32.vlgmr.msra.gmra.mxu3 %vm77_vm6, %v1324_v38 }
  0x9a   :  { %1340 = vmatpush.msk.msrb.mxu3 %vm81_vm5, %v506_v32  ;;  %v1031_v32 = vperm.slane %v1738_v27, 2 }
  0x9c   :  { %1349 = vmatpush.msk.msra.mxu3 %vm81_vm5, %v1483_v17 }
  0x9d   :  { %v191_v40 = vpop.permute.xlu0 %190 }
  0x9e   :  { %v199_v46 = vsel %vm198_vm11, %v191_v40, %v1565_v3  ;;  %v206_v47 = vsel %vm198_vm11, %v1534_v43, %v191_v40  ;;  %v324_v48 = vpop.permute.xlu1 %323  ;;  %v1333_v43 = vld [vmem:[%s1850_s1 + $0x18] sm:$0xff]  ;;  %vm357_vm11 = vcmp.eq.s32.totalorder %v353_v54, 1  ;;  %v497_v3 = vperm.slane %v1587_v12, 2  ;;  %v1351_v40 = vld [vmem:[%s1850_s1 + $0x28] sm:$0xff]  ;;  %v1360_v54 = vld [vmem:[%s1850_s1 + $0x30] sm:$0xff] }
  0x9f   :  { %v349_v49 = vsel %vm341_vm3, %v324_v48, %v334_v37  ;;  %v216_v50 = vsel %vm212_vm8, %v206_v47, 0.0  ;;  %v217_v51 = vsel %vm213_vm9, %v199_v46, 0.0  ;;  %v1650_v55 = vpop.permute.xlu2 %723  ;;  %v1699_v12 = vsel %vm1624_vm7, 1, %v1430_v45 }
  0xa0   :  { %v360_v17 = vsel %vm1630_vm12, %v349_v49, 0.0  ;;  %1316 = vmatpush.msk.msrb.mxu0 %vm81_vm5, %v216_v50  ;;  %1318 = vmatpush.msk.msrb.mxu1 %vm81_vm5, %v217_v51  ;;  %vm1677_vm14 = vcmp.eq.s32.totalorder %v497_v3, 1  ;;  %v888_v24 = vperm.slane %v1699_v12, 2  ;;  %v887_v29 = vperm.slane %v1699_v12, 1 }
  0xa1   :  { %1317 = vmatmul.msk.f32.vlgmr.msrb.gmra.mxu0 %vm77_vm6, %v1315_v18  ;;  %1319 = vmatmul.msk.f32.vlgmr.msrb.gmra.mxu1 %vm77_vm6, %v1315_v18  ;;  %vm1014_vm8 = vcmask 916480   ;;  %vm1755_vm12 = vcmp.eq.s32.totalorder %v1031_v32, 1  ;;  %v745_v51 = vperm.slane %v1671_v2, 3 }
  0xa2   :  { %1325 = vmatpush.msk.msra.mxu0 %vm81_vm5, %v360_v17  ;;  %1341 = vmatmul.msk.f32.vlgmr.msrb.gmra.mxu3 %vm77_vm6, %v1333_v43  ;;  %vm1723_vm7 = vcmp.eq.s32.totalorder %v888_v24, 1  ;;  %vm1750_vm9 = vcmp.eq.s32.totalorder %v887_v29, 1 }
  0xa5   :  { %v1652_v56 = vpop.permute.xlu0 %725 }
  0xa6   :  { %v336_v57 = vpop.permute.xlu1 %335  ;;  %v730_v10 = vsel %vm727_vm13, %v1650_v55, %v1652_v56 }
  0xa7   :  { %v343_v58 = vsel %vm341_vm3, %v336_v57, %v1547_v52  ;;  %v342_v59 = vsel %vm341_vm3, %v334_v37, %v336_v57  ;;  %v1666_v52 = vpop.permute.xlu2 %868  ;;  %vm1689_vm3 = vcmp.eq.s32.totalorder %v744_v5, 1  ;;  %v1029_v5 = vperm.slane %v1738_v27, 0 }
  0xa8   :  { %v362_v60 = vsel %vm358_vm1, %v343_v58, 0.0  ;;  %v361_v61 = vsel %vm357_vm11, %v342_v59, 0.0  ;;  %v752_v23 = vsel %vm1689_vm3, %v730_v10, 0.0  ;;  %vm746_vm1 = vcmp.eq.s32.totalorder %v742_v33, 1  ;;  %vm1171_vm3 = vmand %vm25_vm4, %vm26_vm10 }
  0xa9   :  { %1329 = vmatpush.msk.msra.mxu2 %vm81_vm5, %v362_v60  ;;  %1327 = vmatpush.msk.msra.mxu1 %vm81_vm5, %v361_v61  ;;  %v889_v60 = vperm.slane %v1699_v12, 3  ;;  %v1032_v61 = vperm.slane %v1738_v27, 3  ;;  %v1172_v7 = vsel %vm1171_vm3, 1, %v1430_v45  ;;  %vm1157_vm10 = vcmask 908288  }
  0xaa   :  { %1330 = vmatmul.msk.f32.vlgmr.msra.gmra.mxu2 %vm77_vm6, %v1324_v38  ;;  %1326 = vmatmul.msk.f32.vlgmr.msra.gmra.mxu0 %vm77_vm6, %v1324_v38  ;;  %v1175_v42 = vperm.slane %v1172_v7, 2  ;;  %v1176_v25 = vperm.slane %v1172_v7, 3 }
  0xab   :  { %1328 = vmatmul.msk.f32.vlgmr.msra.gmra.mxu1 %vm77_vm6, %v1324_v38  ;;  %1350 = vmatmul.msk.f32.vlgmr.msra.gmra.mxu3 %vm77_vm6, %v1342_v62 }
  0xac   :  { %vm1179_vm4 = vcmp.eq.s32.totalorder %v1175_v42, 1 }
  0xae   :  { %v468_v63 = vpop.permute.xlu0 %467  ;;  %v867_v0 = vpop.permute.xlu1 %866 }
  0xaf   :  { %v720_v19 = vpop.permute.xlu2 %719 }
  0xb6   :  { %v480_v11 = vpop.permute.xlu0 %479  ;;  %v478_v13 = vpop.permute.xlu1 %477 }
  0xb7   :  { %v487_v14 = vsel %vm485_vm15, %v480_v11, %v1605_v26  ;;  %v486_v15 = vsel %vm485_vm15, %v478_v13, %v480_v11  ;;  %v493_v18 = vsel %vm485_vm15, %v468_v63, %v478_v13  ;;  %vm870_vm15 = vcmask 924672   ;;  %v1378_v13 = vld [vmem:[%s1850_s1 + $0x40] sm:$0xff] }
  0xb8   :  { %v505_v20 = vsel %vm1677_vm14, %v487_v14, 0.0  ;;  %v503_v21 = vsel %vm1681_vm0, %v493_v18, 0.0  ;;  %v504_v22 = vsel %vm1685_vm2, %v486_v15, 0.0  ;;  %v873_v26 = vsel %vm870_vm15, %v867_v0, %v1666_v52 }
  0xb9   :  { %1338 = vmatpush.msk.msrb.mxu2 %vm81_vm5, %v505_v20  ;;  %1334 = vmatpush.msk.msrb.mxu0 %vm81_vm5, %v503_v21  ;;  %v896_v28 = vsel %vm1723_vm7, %v873_v26, 0.0  ;;  %vm749_vm14 = vcmp.eq.s32.totalorder %v745_v51, 1  ;;  %vm1036_vm2 = vcmp.eq.s32.totalorder %v1032_v61, 1  ;;  %vm1034_vm7 = vcmp.eq.s32.totalorder %v1030_v4, 1  ;;  %v29_v51 = vld [vmem:[%s1851_s2 + $0x10] sm:$0xff] }
  0xba   :  { %1339 = vmatmul.msk.f32.vlgmr.msrb.gmra.mxu2 %vm77_vm6, %v1333_v43  ;;  %1336 = vmatpush.msk.msrb.mxu1 %vm81_vm5, %v504_v22  ;;  %v1174_v15 = vperm.slane %v1172_v7, 1  ;;  %v1173_v18 = vperm.slane %v1172_v7, 0  ;;  %v30_v7 = vld [vmem:[%s1851_s2 + $0x18] sm:$0xff] }
  0xbb   :  { %1347 = vmatpush.msk.msra.mxu2 %vm81_vm5, %v1481_v16  ;;  %1335 = vmatmul.msk.f32.vlgmr.msrb.gmra.mxu0 %vm77_vm6, %v1333_v43 }
  0xbc   :  { %1337 = vmatmul.msk.f32.vlgmr.msrb.gmra.mxu1 %vm77_vm6, %v1333_v43  ;;  %1343 = vmatpush.msk.msra.mxu0 %vm81_vm5, %v1503_v30  ;;  %v743_v30 = vperm.slane %v1671_v2, 1 }
  0xbd   :  { %1356 = vmatpush.msk.msrb.mxu2 %vm81_vm5, %v752_v23  ;;  %1345 = vmatpush.msk.msra.mxu1 %vm81_vm5, %v1505_v31 }
  0xbe   :  { %v1733_v16 = vpop.permute.xlu0 %1010  ;;  %v865_v34 = vpop.permute.xlu2 %864  ;;  %vm747_vm11 = vcmp.eq.s32.totalorder %v743_v30, 1 }
  0xbf   :  { %v1013_v31 = vpop.permute.xlu1 %1012  ;;  %v872_v36 = vsel %vm870_vm15, %v865_v34, %v867_v0 }
  0xc0   :  { %v1017_v38 = vsel %vm1014_vm8, %v1733_v16, %v1013_v31  ;;  %v895_v47 = vsel %vm1750_vm9, %v872_v36, 0.0  ;;  %vm1033_vm9 = vcmp.eq.s32.totalorder %v1029_v5, 1 }
  0xc1   :  { %v1039_v48 = vsel %vm1755_vm12, %v1017_v38, 0.0  ;;  %vm1180_vm12 = vcmp.eq.s32.totalorder %v1176_v25, 1 }
  0xc2   :  { %1348 = vmatmul.msk.f32.vlgmr.msra.gmra.mxu2 %vm77_vm6, %v1342_v62 }
  0xc3   :  { %1344 = vmatmul.msk.f32.vlgmr.msra.gmra.mxu0 %vm77_vm6, %v1342_v62  ;;  %1365 = vmatpush.msk.msra.mxu2 %vm81_vm5, %v896_v28 }
  0xc4   :  { %1346 = vmatmul.msk.f32.vlgmr.msra.gmra.mxu1 %vm77_vm6, %v1342_v62 }
  0xc6   :  { %v722_v39 = vpop.permute.xlu0 %721 }
  0xc7   :  { %v728_v44 = vsel %vm727_vm13, %v720_v19, %v722_v39  ;;  %v729_v46 = vsel %vm727_vm13, %v722_v39, %v1650_v55  ;;  %v886_v55 = vperm.slane %v1699_v12, 0 }
  0xc8   :  { %v750_v49 = vsel %vm746_vm1, %v728_v44, 0.0  ;;  %v751_v50 = vsel %vm747_vm11, %v729_v46, 0.0 }
  0xc9   :  { %1354 = vmatpush.msk.msrb.mxu1 %vm81_vm5, %v751_v50  ;;  %1352 = vmatpush.msk.msrb.mxu0 %vm81_vm5, %v750_v49  ;;  %vm890_vm0 = vcmp.eq.s32.totalorder %v886_v55, 1 }
  0xca   :  { %1357 = vmatmul.msk.f32.vlgmr.msrb.gmra.mxu2 %vm77_vm6, %v1351_v40 }
  0xcb   :  { %1363 = vmatpush.msk.msra.mxu1 %vm81_vm5, %v895_v47  ;;  %1353 = vmatmul.msk.f32.vlgmr.msrb.gmra.mxu0 %vm77_vm6, %v1351_v40 }
  0xcc   :  { %1374 = vmatpush.msk.msrb.mxu2 %vm81_vm5, %v1039_v48  ;;  %1355 = vmatmul.msk.f32.vlgmr.msrb.gmra.mxu1 %vm77_vm6, %v1351_v40 }
  0xce   :  { %v738_v17 = vpop.permute.xlu1 %737 }
  0xcf   :  { %v740_v53 = vsel %vm727_vm13, %v1652_v56, %v738_v17  ;;  %v1369_v56 = vld [vmem:[%s1850_s1 + $0x38] sm:$0xff]  ;;  %vm893_vm13 = vcmp.eq.s32.totalorder %v889_v60, 1  ;;  %v28_v17 = vld [vmem:[%s1851_s2 + $0x8] sm:$0xff] }
  0xd0   :  { %v753_v43 = vsel %vm749_vm14, %v740_v53, 0.0 }
  0xd1   :  { %1358 = vmatpush.msk.msrb.mxu3 %vm81_vm5, %v753_v43 }
  0xd2   :  { %1366 = vmatmul.msk.f32.vlgmr.msra.gmra.mxu2 %vm77_vm6, %v1360_v54  ;;  %1359 = vmatmul.msk.f32.vlgmr.msrb.gmra.mxu3 %vm77_vm6, %v1351_v40 }
  0xd4   :  { %1364 = vmatmul.msk.f32.vlgmr.msra.gmra.mxu1 %vm77_vm6, %v1360_v54 }
  0xd6   :  { %v863_v57 = vpop.permute.xlu1 %862  ;;  %v1025_v62 = vpop.permute.xlu2 %1024 }
  0xd7   :  { %v871_v58 = vsel %vm870_vm15, %v863_v57, %v865_v34  ;;  %v1027_v63 = vsel %vm1014_vm8, %v1013_v31, %v1025_v62 }
  0xd8   :  { %v894_v59 = vsel %vm890_vm0, %v871_v58, 0.0  ;;  %v1040_v1 = vsel %vm1036_vm2, %v1027_v63, 0.0 }
  0xd9   :  { %1361 = vmatpush.msk.msra.mxu0 %vm81_vm5, %v894_v59 }
  0xda   :  { %1375 = vmatmul.msk.f32.vlgmr.msrb.gmra.mxu2 %vm77_vm6, %v1369_v56  ;;  %1362 = vmatmul.msk.f32.vlgmr.msra.gmra.mxu0 %vm77_vm6, %v1360_v54 }
  0xde   :  { %v881_v0 = vpop.permute.xlu0 %880  ;;  %v1154_v41 = vpop.permute.xlu2 %1153 }
  0xdf   :  { %v883_v2 = vsel %vm870_vm15, %v1666_v52, %v881_v0  ;;  %vm1178_vm15 = vcmp.eq.s32.totalorder %v1174_v15, 1 }
  0xe0   :  { %v897_v3 = vsel %vm893_vm13, %v883_v2, 0.0 }
  0xe1   :  { %1367 = vmatpush.msk.msra.mxu3 %vm81_vm5, %v897_v3 }
  0xe2   :  { %1368 = vmatmul.msk.f32.vlgmr.msra.gmra.mxu3 %vm77_vm6, %v1360_v54  ;;  %v27_v54 = vld [vmem:[%s1851_s2] sm:$0xff]  ;;  %s1432_s2 = smov [#allocation2]  }
  0xe3   :  { %1376 = vmatpush.msk.msrb.mxu3 %vm81_vm5, %v1040_v1  ;;  %s1295_s27 = sshll.u32 %s1432_s2, 4  ;;  %s1296_s27 = int_to_ptr.vmem [resolvable:$true] %s1295_s27 }
  0xe6   :  { %v1009_v52 = vpop.permute.xlu1 %1008  ;;  %v1007_v6 = vpop.permute.xlu0 %1006 }
  0xe7   :  { %v1016_v8 = vsel %vm1014_vm8, %v1009_v52, %v1733_v16  ;;  %v1015_v9 = vsel %vm1014_vm8, %v1007_v6, %v1009_v52  ;;  %v1150_v19 = vpop.permute.xlu2 %1149  ;;  %vm1177_vm8 = vcmp.eq.s32.totalorder %v1173_v18, 1 }
  0xe8   :  { %v1038_v10 = vsel %vm1034_vm7, %v1016_v8, 0.0  ;;  %v1037_v11 = vsel %vm1033_vm9, %v1015_v9, 0.0 }
  0xe9   :  { %1370 = vmatpush.msk.msrb.mxu0 %vm81_vm5, %v1037_v11  ;;  %1372 = vmatpush.msk.msrb.mxu1 %vm81_vm5, %v1038_v10 }
  0xea   :  { %1371 = vmatmul.msk.f32.vlgmr.msrb.gmra.mxu0 %vm77_vm6, %v1369_v56  ;;  %1373 = vmatmul.msk.f32.vlgmr.msrb.gmra.mxu1 %vm77_vm6, %v1369_v56 }
  0xeb   :  { %1377 = vmatmul.msk.f32.vlgmr.msrb.gmra.mxu3 %vm77_vm6, %v1369_v56 }
  0xee   :  { %v1156_v45 = vpop.permute.xlu0 %1155 }
  0xef   :  { %v1160_v12 = vsel %vm1157_vm10, %v1154_v41, %v1156_v45 }
  0xf0   :  { %v1183_v14 = vsel %vm1179_vm4, %v1160_v12, 0.0 }
  0xf1   :  { %1383 = vmatpush.msk.msra.mxu2 %vm81_vm5, %v1183_v14 }
  0xf2   :  { %1384 = vmatmul.msk.f32.vlgmr.msra.gmra.mxu2 %vm77_vm6, %v1378_v13 }
  0xf6   :  { %v1152_v20 = vpop.permute.xlu0 %1151 }
  0xf7   :  { %v1159_v21 = vsel %vm1157_vm10, %v1152_v20, %v1154_v41  ;;  %v1158_v22 = vsel %vm1157_vm10, %v1150_v19, %v1152_v20 }
  0xf8   :  { %v1182_v23 = vsel %vm1178_vm15, %v1159_v21, 0.0  ;;  %v1181_v24 = vsel %vm1177_vm8, %v1158_v22, 0.0 }
  0xf9   :  { %1379 = vmatpush.msk.msra.mxu0 %vm81_vm5, %v1181_v24  ;;  %1381 = vmatpush.msk.msra.mxu1 %vm81_vm5, %v1182_v23 }
  0xfa   :  { %1380 = vmatmul.msk.f32.vlgmr.msra.gmra.mxu0 %vm77_vm6, %v1378_v13  ;;  %1382 = vmatmul.msk.f32.vlgmr.msra.gmra.mxu1 %vm77_vm6, %v1378_v13 }
  0xfe   :  { %v1168_v26 = vpop.permute.xlu1 %1167 }
  0xff   :  { %v1170_v16 = vsel %vm1157_vm10, %v1156_v45, %v1168_v26 }
 0x100   :  { %v1184_v27 = vsel %vm1180_vm12, %v1170_v16, 0.0 }
 0x101   :  { %1385 = vmatpush.msk.msra.mxu3 %vm81_vm5, %v1184_v27 }
 0x102   :  { %1386 = vmatmul.msk.f32.vlgmr.msra.gmra.mxu3 %vm77_vm6, %v1378_v13 }
 0x103   :  { %v171_v31 = vpop.f32.mrf.mxu3 }
 0x104   :  { %v177_v42 = vadd.f32 %v171_v31, %v30_v7 }
 0x106   :  { %v111_v29 = vpop.f32.mrf.mxu0 }
 0x107   :  { %v131_v32 = vpop.f32.mrf.mxu1  ;;  %v174_v56 = vadd.f32 %v111_v29, %v27_v54 }
 0x108   :  { %v175_v55 = vadd.f32 %v131_v32, %v28_v17 }
 0x10c   :  { %v151_v28 = vpop.f32.mrf.mxu2 }
 0x10d   :  { %v176_v43 = vadd.f32 %v151_v28, %v29_v51 }
 0x114   :  { %v294_v33 = vpop.f32.mrf.mxu2  ;;  %v314_v38 = vpop.f32.mrf.mxu3 }
 0x115   :  { %v319_v59 = vadd.f32 %v294_v33, %v176_v43  ;;  %v320_v15 = vadd.f32 %v314_v38, %v177_v42 }
 0x11c   :  { %v458_v46 = vpop.f32.mrf.mxu3 }
 0x11d   :  { %v464_v25 = vadd.f32 %v458_v46, %v320_v15 }
 0x11e   :  { %v254_v30 = vpop.f32.mrf.mxu0  ;;  %v274_v34 = vpop.f32.mrf.mxu1 }
 0x11f   :  { %v318_v60 = vadd.f32 %v274_v34, %v175_v55  ;;  %v317_v62 = vadd.f32 %v254_v30, %v174_v56 }
 0x125   :  { %v601_v50 = vpop.f32.mrf.mxu3 }
 0x126   :  { %v607_v30 = vadd.f32 %v601_v50, %v464_v25 }
 0x127   :  { %v398_v36 = vpop.f32.mrf.mxu0 }
 0x128   :  { %v418_v37 = vpop.f32.mrf.mxu1  ;;  %v461_v3 = vadd.f32 %v398_v36, %v317_v62 }
 0x129   :  { %v462_v2 = vadd.f32 %v418_v37, %v318_v60 }
 0x12d   :  { %v438_v35 = vpop.f32.mrf.mxu2 }
 0x12e   :  { %v705_v61 = vpop.f32.mrf.mxu3  ;;  %v463_v0 = vadd.f32 %v438_v35, %v319_v59 }
 0x12f   :  { %v711_v31 = vadd.f32 %v705_v61, %v607_v30 }
 0x138   :  { %v541_v40 = vpop.f32.mrf.mxu0 }
 0x139   :  { %v561_v44 = vpop.f32.mrf.mxu1  ;;  %v604_v6 = vadd.f32 %v541_v40, %v461_v3 }
 0x13a   :  { %v605_v52 = vadd.f32 %v561_v44, %v462_v2 }
 0x13d   :  { %v581_v39 = vpop.f32.mrf.mxu2 }
 0x13e   :  { %v606_v5 = vadd.f32 %v581_v39, %v463_v0 }
 0x140   :  { %v645_v48 = vpop.f32.mrf.mxu0 }
 0x141   :  { %v665_v49 = vpop.f32.mrf.mxu1  ;;  %v708_v41 = vadd.f32 %v645_v48, %v604_v6 }
 0x142   :  { %v709_v10 = vadd.f32 %v665_v49, %v605_v52 }
 0x145   :  { %v685_v47 = vpop.f32.mrf.mxu2 }
 0x146   :  { %v710_v9 = vadd.f32 %v685_v47, %v606_v5 }
 0x148   :  { %v788_v57 = vpop.f32.mrf.mxu0 }
 0x149   :  { %v808_v58 = vpop.f32.mrf.mxu1  ;;  %v851_v18 = vadd.f32 %v788_v57, %v708_v41 }
 0x14a   :  { %v852_v14 = vadd.f32 %v808_v58, %v709_v10 }
 0x14d   :  { %v828_v53 = vpop.f32.mrf.mxu2 }
 0x14e   :  { %v853_v13 = vadd.f32 %v828_v53, %v710_v9 }
 0x151   :  { %v952_v4 = vpop.f32.mrf.mxu1 }
 0x152   :  { %v996_v22 = vadd.f32 %v952_v4, %v852_v14 }
 0x155   :  { %v972_v63 = vpop.f32.mrf.mxu2  ;;  %v848_v8 = vpop.f32.mrf.mxu3 }
 0x156   :  { %v997_v19 = vadd.f32 %v972_v63, %v853_v13  ;;  %v854_v35 = vadd.f32 %v848_v8, %v711_v31 }
 0x157   :  { %v932_v1 = vpop.f32.mrf.mxu0 }
 0x158   :  { %v995_v21 = vadd.f32 %v932_v1, %v851_v18 }
 0x15d   :  { %v1115_v11 = vpop.f32.mrf.mxu2 }
 0x15e   :  { %v1140_v23 = vadd.f32 %v1115_v11, %v997_v19 }
 0x165   :  { %v992_v20 = vpop.f32.mrf.mxu3 }
 0x166   :  { %v998_v36 = vadd.f32 %v992_v20, %v854_v35 }
 0x167   :  { %v1075_v45 = vpop.f32.mrf.mxu0  ;;  %v1095_v12 = vpop.f32.mrf.mxu1 }
 0x168   :  { %v1138_v26 = vadd.f32 %v1075_v45, %v995_v21  ;;  %v1139_v16 = vadd.f32 %v1095_v12, %v996_v22 }
 0x16e   :  { %v1135_v34 = vpop.f32.mrf.mxu3 }
 0x16f   :  { %v1141_v37 = vadd.f32 %v1135_v34, %v998_v36 }
 0x175   :  { %v1259_v24 = vpop.f32.mrf.mxu2 }
 0x176   :  { %v1284_v27 = vadd.f32 %v1259_v24, %v1140_v23 }
 0x177   :  { %v1219_v28 = vpop.f32.mrf.mxu0  ;;  %v1239_v29 = vpop.f32.mrf.mxu1 }
 0x178   :  { %1288 = vst [vmem:[#allocation2 + $0x10] sm:$0xff] %v1284_v27  ;;  %v1282_v32 = vadd.f32 %v1219_v28, %v1138_v26  ;;  %v1283_v33 = vadd.f32 %v1239_v29, %v1139_v16 }
 0x17a   :  { %1286 = vst [vmem:[#allocation2] sm:$0xff] %v1282_v32 }
 0x17b   :  { %1287 = vst [vmem:[#allocation2 + $0x8] sm:$0xff] %v1283_v33 }
 0x185   :  { %v1279_v38 = vpop.f32.mrf.mxu3 }
 0x186   :  { %v1285_v39 = vadd.f32 %v1279_v38, %v1141_v37 }
 0x188   :  { %1289 = vst [vmem:[#allocation2 + $0x18] sm:$0xff] %v1285_v39 }
 0x189   :  { %1300 = dma.vmem_to_hbm [thread:$0]  %s1296_s27, 512, %s1298_s3, [#allocation3]  }
 0x18a   :  { %1421 = dma.done.wait [#allocation3], 512  }
 0x18b   :  { %1422 = vsyncadd [#allocation3], 4294966784 }
 0x18c   :  { %1305 = vsyncpa [#allocation3], 1 }

</bundles_post_ra>
